<compile_context>
chip_gen: v6e
topology: v6e:2x2x1
jax: 0.10.0
libtpu: 0.0.40
codegen_flags: <defaults>
</compile_context>

<pallas_src>
import numpy as np
import jax
import jax.numpy as jnp
from jax import lax
from jax.experimental import pallas as pl
from jax.experimental.pallas import tpu as pltpu


# --------------------------------------------------------------------------
# Pallas kernel: one (Bb batch elements, Dt feature slab) tile per grid step.
# --------------------------------------------------------------------------
def bertdm_kernel(anchor_ref, length_ref,       # (Bb,1,1) int32  (VMEM)
                  transform_ref, bertx_ref,     # (Bb,T,L) bf16, (Bb,L,Dt) bf16
                  w_ref, b_ref,                 # (3,Dt,128) f32, (1,128) f32
                  out_ref,                      # (Bb,128) f32 (lane-dense)
                  acc_ref):                     # scratch (Bb,128) f32
    dt = pl.program_id(1)
    Bb, T, _L = transform_ref.shape

    @pl.when(dt == 0)
    def _():
        acc_ref[...] = jnp.zeros_like(acc_ref)

    # Batched bmm for the whole batch block: (Bb,T,L) @ (Bb,L,Dt) -> (Bb,T,Dt).
    # bf16 inputs (halves HBM->VMEM DMA bytes), f32 accumulation on the MXU.
    tx = jnp.einsum('btl,bld->btd', transform_ref[...], bertx_ref[...],
                    preferred_element_type=jnp.float32)

    # (T,1) position iota broadcast against per-row (Bb,1,1) anchor / length.
    t_idx = lax.broadcasted_iota(jnp.int32, (T, 1), 0)
    anchor = anchor_ref[...]                    # (Bb,1,1) int32
    length = length_ref[...]                    # (Bb,1,1) int32

    # get_mask(): maskL = t < anchor+1 ; maskR = (t > anchor) & (t < length)
    maskL = t_idx < (anchor + 1)                # (Bb,T,1) bool
    maskR = jnp.logical_and(t_idx > anchor, t_idx < length)
    maskA = t_idx == anchor                     # exactly one True row per batch

    # torch: (x*mask + 1).max(dim=T) - 1  ==  max_T(where(mask, x, 0))
    pooledL = jnp.max(jnp.where(maskL, tx, 0.0), axis=1)        # (Bb, Dt)
    pooledR = jnp.max(jnp.where(maskR, tx, 0.0), axis=1)        # (Bb, Dt)
    # anchor row via masked sum (no scratch, no dynamic sublane slice, OOB-safe)
    anchor_rep = jnp.sum(jnp.where(maskA, tx, 0.0), axis=1)     # (Bb, Dt)

    # dense( cat(anchor_rep, pooledL, pooledR) ), accumulated over D tiles.
    # w_ref[k] is the (Dt,128) weight slab for feature group k of this D tile.
    # TODO(synk): nn.Dropout is identity in eval mode; no stochastic dropout here.
    acc_ref[...] += (
        jnp.dot(anchor_rep, w_ref[0], preferred_element_type=jnp.float32)
        + jnp.dot(pooledL, w_ref[1], preferred_element_type=jnp.float32)
        + jnp.dot(pooledR, w_ref[2], preferred_element_type=jnp.float32))

    @pl.when(dt == pl.num_programs(1) - 1)
    def _():
        out_ref[...] = acc_ref[...] + b_ref[...]


def bertdm_forward(transform, bert_x, anchor_index, sentence_length,
                   dense_w, dense_b, *, block_b=8, d_tile=512):
    """transform: (B,T,L) f32, bert_x: (B,L,D) f32, dense_w: (3D,P) f32,
    dense_b: (1,P) f32 -> logits (B,P) f32.

    block_b should be a multiple of 8 (or >= B); for v7x pick it so that
    ceil(B/block_b) >= 2 so both TensorCores get work.
    """
    B, T, L = transform.shape
    D = bert_x.shape[-1]
    P = dense_w.shape[-1]
    P_PAD = 128                                   # lane-dense output/weight padding

    # --- MXU/lane alignment: T -> mult of 8 (sublane), L (bmm K) -> mult of 128.
    # Zero padding contributes 0 to the bmm; padded T rows are excluded by the
    # masks (anchor < length <= T always for real rows).
    T_pad = -(-T // 8) * 8
    L_pad = -(-L // 128) * 128
    transform = jnp.pad(transform, ((0, 0), (0, T_pad - T), (0, L_pad - L)))
    bert_x = jnp.pad(bert_x, ((0, 0), (0, L_pad - L), (0, 0)))

    # --- batch blocking: Bb batch elements per grid step.
    # NOTE: padded batch rows (anchor=0, length=0) produce logits == bias and
    # are discarded by the final slice -- don't rely on them being meaningful.
    Bb = min(block_b, B)
    n_blocks = -(-B // Bb)
    B_pad = n_blocks * Bb
    if B_pad != B:
        pad = B_pad - B
        transform = jnp.pad(transform, ((0, pad), (0, 0), (0, 0)))
        bert_x = jnp.pad(bert_x, ((0, pad), (0, 0), (0, 0)))
        anchor_index = jnp.pad(anchor_index, (0, pad))
        sentence_length = jnp.pad(sentence_length, (0, pad))

    # --- innermost D-tile ("arbitrary") axis; Dt must divide D and be lane-aligned.
    if D > d_tile and d_tile % 128 == 0 and D % d_tile == 0:
        Dt = d_tile
    else:
        Dt = D
    n_dt = D // Dt

    # lane-dense dense parameters: (3, D, 128) weight slab, (1, 128) bias.
    w3 = jnp.zeros((3, D, P_PAD), jnp.float32).at[:, :, :P].set(
        dense_w.reshape(3, D, P))
    b_pad = jnp.zeros((1, P_PAD), jnp.float32).at[:, :P].set(dense_b.reshape(1, P))

    # bf16 inputs for the bmm (the dominant DMA traffic); accumulation stays f32.
    # TODO(synk): in production emit bf16 directly from the encoder / transform
    # producer so no standalone cast pass hits HBM on v6e; under jit the
    # pad+cast here fuse into a single pass around the pallas_call.
    transform_bf = transform.astype(jnp.bfloat16)
    bertx_bf = bert_x.astype(jnp.bfloat16)
    anchor3 = anchor_index.astype(jnp.int32).reshape(B_pad, 1, 1)
    length3 = sentence_length.astype(jnp.int32).reshape(B_pad, 1, 1)

    cost = pl.CostEstimate(
        flops=2 * B_pad * T_pad * L_pad * D + 2 * B_pad * 3 * D * P_PAD,
        transcendentals=0,
        bytes_accessed=(2 * B_pad * T_pad * L_pad        # bf16 transform
                        + 2 * B_pad * L_pad * D          # bf16 bert_x
                        + 4 * 3 * D * P_PAD + 4 * P_PAD  # f32 weight + bias
                        + 4 * B_pad * P_PAD              # f32 logits
                        + 2 * 4 * B_pad))                # int32 anchor/length

    grid_spec = pltpu.PrefetchScalarGridSpec(
        num_scalar_prefetch=0,
        grid=(n_blocks, n_dt),                 # D-reduction axis last
        in_specs=[
            pl.BlockSpec((Bb, 1, 1), lambda blk, dt: (blk, 0, 0)),          # anchor
            pl.BlockSpec((Bb, 1, 1), lambda blk, dt: (blk, 0, 0)),          # length
            pl.BlockSpec((Bb, T_pad, L_pad), lambda blk, dt: (blk, 0, 0)),  # transform (dt-invariant -> no refetch)
            pl.BlockSpec((Bb, L_pad, Dt), lambda blk, dt: (blk, 0, dt)),    # bert_x D tile
            pl.BlockSpec((3, Dt, P_PAD), lambda blk, dt: (0, dt, 0)),       # dense W slab
            pl.BlockSpec((1, P_PAD), lambda blk, dt: (0, 0)),               # dense bias
        ],
        out_specs=pl.BlockSpec((Bb, P_PAD), lambda blk, dt: (blk, 0)),
        scratch_shapes=[pltpu.VMEM((Bb, P_PAD), jnp.float32)],
    )
    out = pl.pallas_call(
        bertdm_kernel,
        out_shape=jax.ShapeDtypeStruct((B_pad, P_PAD), jnp.float32),
        grid_spec=grid_spec,
        compiler_params=pltpu.CompilerParams(
            dimension_semantics=("parallel", "arbitrary"),
            vmem_limit_bytes=64 * 1024 * 1024),
        cost_estimate=cost,
    )(anchor3, length3, transform_bf, bertx_bf, w3, b_pad)
    return out[:B, :P]


# --------------------------------------------------------------------------
# Plain-JAX glue: a deterministic synthetic stand-in for the injected BERT.
# Returns all encoder layer outputs (output_all_encoded_layers=True).
# --------------------------------------------------------------------------
def synthetic_bert(token_ids, segment_ids, params):
    L = token_ids.shape[1]
    h = (params["tok_emb"][token_ids]
         + params["seg_emb"][segment_ids]
         + params["pos_emb"][None, :L, :])
    all_layers = []
    for w, b in zip(params["layer_w"], params["layer_b"]):
        h = jnp.tanh(h @ w + b)
        all_layers.append(h)
    pooled = jnp.tanh(h[:, 0, :] @ params["pool_w"] + params["pool_b"])
    return all_layers, pooled


# --------------------------------------------------------------------------
# Pure-JAX reference of the post-BERT part of the forward (same bf16 bmm
# quantization as the kernel so the comparison is apples-to-apples).
# --------------------------------------------------------------------------
def reference(transform, bert_x, anchor_index, sentence_length, dense_w, dense_b):
    tx = jnp.einsum('btl,bld->btd',
                    transform.astype(jnp.bfloat16), bert_x.astype(jnp.bfloat16),
                    preferred_element_type=jnp.float32)
    T = tx.shape[1]
    t = jnp.arange(T)[None, :]
    maskL = (t < (anchor_index[:, None] + 1)).astype(jnp.float32)
    maskR = ((t > anchor_index[:, None]) & (t < sentence_length[:, None])).astype(jnp.float32)
    pooledL = jnp.max(tx * maskL[:, :, None] + 1.0, axis=1) - 1.0
    pooledR = jnp.max(tx * maskR[:, :, None] + 1.0, axis=1) - 1.0
    anchor_rep = jnp.take_along_axis(tx, anchor_index[:, None, None], axis=1)[:, 0, :]
    feat = jnp.concatenate([anchor_rep, pooledL, pooledR], axis=1)
    return feat @ dense_w + dense_b


if __name__ == "__main__":
    key = jax.random.PRNGKey(0)
    keys = jax.random.split(key, 12)

    # small shapes consistent with the module
    B = 2
    max_bert_len = 10     # padded bert sequence length
    max_sent_len = 9      # padded original-sentence length
    vocab = 30
    bert_dim = 32
    n_layer = 2           # opt.n_layer: number of last BERT layers concatenated
    n_bert_layers = 3
    polarities = 3        # opt.polarities_dim
    D = n_layer * bert_dim

    # raw "inputs" dict contents
    cls_text_sep_length = jnp.array([8, 6], dtype=jnp.int32)
    sentence_length = jnp.array([6, 5], dtype=jnp.int32)
    anchor_index = jnp.array([2, 1], dtype=jnp.int32)
    cls_text_sep_indices = jax.random.randint(keys[0], (B, max_bert_len), 0, vocab)
    cls_text_sep_segments_ids = jnp.zeros((B, max_bert_len), dtype=jnp.int32)
    transform_full = jax.random.normal(keys[1], (B, max_sent_len, max_bert_len),
                                       jnp.float32)

    # deterministic synthetic BERT parameters
    bert_params = {
        "tok_emb": 0.1 * jax.random.normal(keys[2], (vocab, bert_dim), jnp.float32),
        "seg_emb": 0.1 * jax.random.normal(keys[3], (2, bert_dim), jnp.float32),
        "pos_emb": 0.1 * jax.random.normal(keys[4], (max_bert_len, bert_dim), jnp.float32),
        "layer_w": [0.1 * jax.random.normal(keys[5 + i], (bert_dim, bert_dim), jnp.float32)
                    for i in range(n_bert_layers)],
        "layer_b": [jnp.zeros((bert_dim,), jnp.float32) for _ in range(n_bert_layers)],
        "pool_w": 0.1 * jax.random.normal(keys[8], (bert_dim, bert_dim), jnp.float32),
        "pool_b": jnp.zeros((bert_dim,), jnp.float32),
    }

    # nn.Linear(3*D, polarities): store as (3D, P) = W^T
    dense_w = 0.1 * jax.random.normal(keys[9], (3 * D, polarities), jnp.float32)
    dense_b = 0.01 * jax.random.normal(keys[10], (1, polarities), jnp.float32)

    # host-side dynamic-shape glue (mirrors .max().cpu().numpy() in the forward).
    # TODO(synk): production should feed fixed padded shapes instead of host-max
    # trimming (avoids a recompile per batch); the wrapper re-pads to aligned
    # shapes anyway, so padded inputs are handled correctly.
    L = int(cls_text_sep_length.max())
    T = int(sentence_length.max())
    text_bert_indices = cls_text_sep_indices[:, :L]
    bert_segments_ids = cls_text_sep_segments_ids[:, :L]
    transform = transform_full[:, :T, :L]

    # BERT encoder (glue, outside the kernel) + concat of last n_layer states
    all_layers, _pooled = synthetic_bert(text_bert_indices, bert_segments_ids, bert_params)
    bert_x = jnp.concatenate(all_layers[-n_layer:], axis=-1)   # (B, L, D)

    # Pallas kernel: bmm + masking + max-pool + anchor gather + dense
    # (jit so the alignment pads and bf16 casts fuse around the pallas_call)
    logits = jax.jit(bertdm_forward)(transform, bert_x, anchor_index,
                                     sentence_length, dense_w, dense_b)
    logits = jax.block_until_ready(logits)

    # correctness check against the pure-JAX reference (bf16 bmm, f32 epilogue)
    ref = reference(transform, bert_x, anchor_index, sentence_length, dense_w, dense_b)
    np.testing.assert_allclose(np.asarray(logits), np.asarray(ref),
                               rtol=2e-3, atol=2e-3)

    print("KERNEL_OK")
</pallas_src>

<mosaic_0001>
module attributes {stable_mosaic.version = 11 : i64} {
  func.func @bertdm_kernel(%arg0: i32, %arg1: i32, %arg2: memref<2x1x1xi32, #tpu.memory_space<vmem>>, %arg3: memref<2x1x1xi32, #tpu.memory_space<vmem>>, %arg4: memref<2x8x128xbf16, #tpu.memory_space<vmem>>, %arg5: memref<2x128x64xbf16, #tpu.memory_space<vmem>>, %arg6: memref<3x64x128xf32, #tpu.memory_space<vmem>>, %arg7: memref<1x128xf32, #tpu.memory_space<vmem>>, %arg8: memref<2x128xf32, #tpu.memory_space<vmem>>, %arg9: memref<2x128xf32, #tpu.memory_space<vmem>>) attributes {dimension_semantics = [#tpu.dimension_semantics<parallel>, #tpu.dimension_semantics<arbitrary>], iteration_bounds = array<i64: 1, 1>, scalar_prefetch = 0 : i64, scratch_operands = 1 : i64, tpu.core_type = #tpu.core_type<tc>, window_params = [{transform_indices = @transform_0, window_bounds = array<i64: 2, 1, 1>}, {transform_indices = @transform_1, window_bounds = array<i64: 2, 1, 1>}, {transform_indices = @transform_2, window_bounds = array<i64: 2, 8, 128>}, {transform_indices = @transform_3, window_bounds = array<i64: 2, 128, 64>}, {transform_indices = @transform_4, window_bounds = array<i64: 3, 64, 128>}, {pipeline_mode = #tpu.pipeline_mode<synchronous>, transform_indices = @transform_5, window_bounds = array<i64: 1, 128>}, {transform_indices = @transform_6, window_bounds = array<i64: 2, 128>}]} {
    %c0_i32 = arith.constant 0 : i32
    %0 = arith.cmpi eq, %arg1, %c0_i32 : i32
    %1 = arith.extui %0 : i1 to i32
    %c0_i32_0 = arith.constant 0 : i32
    %2 = arith.cmpi ne, %1, %c0_i32_0 : i32
    scf.if %2 {
      %cst_34 = arith.constant 0.000000e+00 : f32
      %60 = vector.broadcast %cst_34 : f32 to vector<2x128xf32>
      %c0_35 = arith.constant 0 : index
      %c0_36 = arith.constant 0 : index
      %61 = vector.load %arg9[%c0_35, %c0_36] : memref<2x128xf32, #tpu.memory_space<vmem>>, vector<2x128xf32>
      tpu.vector_store %arg9[%c0_35, %c0_36], %60 {strides = array<i32>} : memref<2x128xf32, #tpu.memory_space<vmem>>, vector<2x128xf32>,
    } else {
    }
    %c0 = arith.constant 0 : index
    %c0_1 = arith.constant 0 : index
    %c0_2 = arith.constant 0 : index
    %3 = vector.load %arg4[%c0, %c0_1, %c0_2] : memref<2x8x128xbf16, #tpu.memory_space<vmem>>, vector<2x8x128xbf16>
    %c0_3 = arith.constant 0 : index
    %c0_4 = arith.constant 0 : index
    %c0_5 = arith.constant 0 : index
    %4 = vector.load %arg5[%c0_3, %c0_4, %c0_5] : memref<2x128x64xbf16, #tpu.memory_space<vmem>>, vector<2x128x64xbf16>
    "tpu.trace_start"() <{level = 10 : i32, message = "btl,bld->btd"}> : () -> ()
    %cst = arith.constant dense<0.000000e+00> : vector<2x8x64xf32>
    %5 = tpu.matmul %3, %4, %cst {dimension_numbers = #tpu.dot_dimension_numbers<[2], [1], [1], [2], [0, 0, 0, 1, 1, 2], [0], [0]>} : vector<2x8x128xbf16>, vector<2x128x64xbf16>, vector<2x8x64xf32> -> vector<2x8x64xf32>
    "tpu.trace_stop"() : () -> ()
    %6 = tpu.iota {dimensions = array<i32: 0>} : vector<8x1xi32>
    %c0_6 = arith.constant 0 : index
    %c0_7 = arith.constant 0 : index
    %c0_8 = arith.constant 0 : index
    %7 = vector.load %arg2[%c0_6, %c0_7, %c0_8] : memref<2x1x1xi32, #tpu.memory_space<vmem>>, vector<2x1x1xi32>
    %c0_9 = arith.constant 0 : index
    %c0_10 = arith.constant 0 : index
    %c0_11 = arith.constant 0 : index
    %8 = vector.load %arg3[%c0_9, %c0_10, %c0_11] : memref<2x1x1xi32, #tpu.memory_space<vmem>>, vector<2x1x1xi32>
    %c1_i32 = arith.constant 1 : i32
    %9 = vector.broadcast %c1_i32 : i32 to vector<2x1x1xi32>
    %10 = arith.addi %7, %9 : vector<2x1x1xi32>
    %11 = vector.shape_cast %6 : vector<8x1xi32> to vector<1x8x1xi32>
    %12 = vector.broadcast %11 : vector<1x8x1xi32> to vector<2x8x1xi32>
    %13 = vector.broadcast %10 : vector<2x1x1xi32> to vector<2x8x1xi32>
    %14 = arith.cmpi slt, %12, %13 : vector<2x8x1xi32>
    %15 = vector.shape_cast %6 : vector<8x1xi32> to vector<1x8x1xi32>
    %16 = vector.broadcast %15 : vector<1x8x1xi32> to vector<2x8x1xi32>
    %17 = vector.broadcast %7 : vector<2x1x1xi32> to vector<2x8x1xi32>
    %18 = arith.cmpi sgt, %16, %17 : vector<2x8x1xi32>
    %19 = vector.shape_cast %6 : vector<8x1xi32> to vector<1x8x1xi32>
    %20 = vector.broadcast %19 : vector<1x8x1xi32> to vector<2x8x1xi32>
    %21 = vector.broadcast %8 : vector<2x1x1xi32> to vector<2x8x1xi32>
    %22 = arith.cmpi slt, %20, %21 : vector<2x8x1xi32>
    %23 = arith.andi %18, %22 : vector<2x8x1xi1>
    %24 = vector.shape_cast %6 : vector<8x1xi32> to vector<1x8x1xi32>
    %25 = vector.broadcast %24 : vector<1x8x1xi32> to vector<2x8x1xi32>
    %26 = vector.broadcast %7 : vector<2x1x1xi32> to vector<2x8x1xi32>
    %27 = arith.cmpi eq, %25, %26 : vector<2x8x1xi32>
    %cst_12 = arith.constant 0.000000e+00 : f32
    %28 = vector.shape_cast %14 : vector<2x8x1xi1> to vector<2x8x1xi1>
    %29 = vector.broadcast %28 : vector<2x8x1xi1> to vector<2x8x64xi1>
    %30 = vector.broadcast %cst_12 : f32 to vector<2x8x64xf32>
    %31 = arith.select %29, %5, %30 : vector<2x8x64xi1>, vector<2x8x64xf32>
    %cst_13 = arith.constant dense<0xFF800000> : vector<2x64xf32>
    %32 = vector.multi_reduction <maximumf>, %31, %cst_13 [1] : vector<2x8x64xf32> to vector<2x64xf32>
    %cst_14 = arith.constant 0.000000e+00 : f32
    %33 = vector.shape_cast %23 : vector<2x8x1xi1> to vector<2x8x1xi1>
    %34 = vector.broadcast %33 : vector<2x8x1xi1> to vector<2x8x64xi1>
    %35 = vector.broadcast %cst_14 : f32 to vector<2x8x64xf32>
    %36 = arith.select %34, %5, %35 : vector<2x8x64xi1>, vector<2x8x64xf32>
    %cst_15 = arith.constant dense<0xFF800000> : vector<2x64xf32>
    %37 = vector.multi_reduction <maximumf>, %36, %cst_15 [1] : vector<2x8x64xf32> to vector<2x64xf32>
    %cst_16 = arith.constant 0.000000e+00 : f32
    %38 = vector.shape_cast %27 : vector<2x8x1xi1> to vector<2x8x1xi1>
    %39 = vector.broadcast %38 : vector<2x8x1xi1> to vector<2x8x64xi1>
    %40 = vector.broadcast %cst_16 : f32 to vector<2x8x64xf32>
    %41 = arith.select %39, %5, %40 : vector<2x8x64xi1>, vector<2x8x64xf32>
    %cst_17 = arith.constant dense<0.000000e+00> : vector<2x64xf32>
    %42 = vector.multi_reduction <add>, %41, %cst_17 [1] : vector<2x8x64xf32> to vector<2x64xf32>
    %c0_18 = arith.constant 0 : index
    %c0_19 = arith.constant 0 : index
    %43 = vector.load %arg9[%c0_18, %c0_19] : memref<2x128xf32, #tpu.memory_space<vmem>>, vector<2x128xf32>
    %c0_20 = arith.constant 0 : index
    %c0_21 = arith.constant 0 : index
    %c0_22 = arith.constant 0 : index
    %44 = vector.load %arg6[%c0_20, %c0_21, %c0_22] : memref<3x64x128xf32, #tpu.memory_space<vmem>>, vector<1x64x128xf32>
    %45 = vector.shape_cast %44 : vector<1x64x128xf32> to vector<64x128xf32>
    %cst_23 = arith.constant dense<0.000000e+00> : vector<2x128xf32>
    %46 = tpu.matmul %42, %45, %cst_23 {dimension_numbers = #tpu.dot_dimension_numbers<[1], [0], [0], [1], [0, 0, 1, 1], [], []>} : vector<2x64xf32>, vector<64x128xf32>, vector<2x128xf32> -> vector<2x128xf32>
    %c1 = arith.constant 1 : index
    %c0_24 = arith.constant 0 : index
    %c0_25 = arith.constant 0 : index
    %47 = vector.load %arg6[%c1, %c0_24, %c0_25] : memref<3x64x128xf32, #tpu.memory_space<vmem>>, vector<1x64x128xf32>
    %48 = vector.shape_cast %47 : vector<1x64x128xf32> to vector<64x128xf32>
    %cst_26 = arith.constant dense<0.000000e+00> : vector<2x128xf32>
    %49 = tpu.matmul %32, %48, %cst_26 {dimension_numbers = #tpu.dot_dimension_numbers<[1], [0], [0], [1], [0, 0, 1, 1], [], []>} : vector<2x64xf32>, vector<64x128xf32>, vector<2x128xf32> -> vector<2x128xf32>
    %50 = arith.addf %46, %49 : vector<2x128xf32>
    %c2 = arith.constant 2 : index
    %c0_27 = arith.constant 0 : index
    %c0_28 = arith.constant 0 : index
    %51 = vector.load %arg6[%c2, %c0_27, %c0_28] : memref<3x64x128xf32, #tpu.memory_space<vmem>>, vector<1x64x128xf32>
    %52 = vector.shape_cast %51 : vector<1x64x128xf32> to vector<64x128xf32>
    %cst_29 = arith.constant dense<0.000000e+00> : vector<2x128xf32>
    %53 = tpu.matmul %37, %52, %cst_29 {dimension_numbers = #tpu.dot_dimension_numbers<[1], [0], [0], [1], [0, 0, 1, 1], [], []>} : vector<2x64xf32>, vector<64x128xf32>, vector<2x128xf32> -> vector<2x128xf32>
    %54 = arith.addf %50, %53 : vector<2x128xf32>
    %55 = arith.addf %43, %54 : vector<2x128xf32>
    %c0_30 = arith.constant 0 : index
    %c0_31 = arith.constant 0 : index
    %56 = vector.load %arg9[%c0_30, %c0_31] : memref<2x128xf32, #tpu.memory_space<vmem>>, vector<2x128xf32>
    tpu.vector_store %arg9[%c0_30, %c0_31], %55 {strides = array<i32>} : memref<2x128xf32, #tpu.memory_space<vmem>>, vector<2x128xf32>,
    %c0_i32_32 = arith.constant 0 : i32
    %57 = arith.cmpi eq, %arg1, %c0_i32_32 : i32
    %58 = arith.extui %57 : i1 to i32
    %c0_i32_33 = arith.constant 0 : i32
    %59 = arith.cmpi ne, %58, %c0_i32_33 : i32
    scf.if %59 {
      %c0_34 = arith.constant 0 : index
      %c0_35 = arith.constant 0 : index
      %60 = vector.load %arg9[%c0_34, %c0_35] : memref<2x128xf32, #tpu.memory_space<vmem>>, vector<2x128xf32>
      %c0_36 = arith.constant 0 : index
      %c0_37 = arith.constant 0 : index
      %61 = vector.load %arg7[%c0_36, %c0_37] : memref<1x128xf32, #tpu.memory_space<vmem>>, vector<1x128xf32>
      %62 = vector.broadcast %61 : vector<1x128xf32> to vector<2x128xf32>
      %63 = arith.addf %60, %62 : vector<2x128xf32>
      %c0_38 = arith.constant 0 : index
      %c0_39 = arith.constant 0 : index
      %64 = vector.load %arg8[%c0_38, %c0_39] : memref<2x128xf32, #tpu.memory_space<vmem>>, vector<2x128xf32>
      tpu.vector_store %arg8[%c0_38, %c0_39], %63 {strides = array<i32>} : memref<2x128xf32, #tpu.memory_space<vmem>>, vector<2x128xf32>,
    } else {
    }
    return
  }
  func.func @transform_0(%arg0: i32, %arg1: i32) -> (i32, i32, i32) {
    %c0_i32 = arith.constant 0 : i32
    %c0_i32_0 = arith.constant 0 : i32
    %c0_i32_1 = arith.constant 0 : i32
    return %arg0, %c0_i32, %c0_i32_0 : i32, i32, i32
  }
  func.func @transform_1(%arg0: i32, %arg1: i32) -> (i32, i32, i32) {
    %c0_i32 = arith.constant 0 : i32
    %c0_i32_0 = arith.constant 0 : i32
    %c0_i32_1 = arith.constant 0 : i32
    return %arg0, %c0_i32, %c0_i32_0 : i32, i32, i32
  }
  func.func @transform_2(%arg0: i32, %arg1: i32) -> (i32, i32, i32) {
    %c0_i32 = arith.constant 0 : i32
    %c0_i32_0 = arith.constant 0 : i32
    %c0_i32_1 = arith.constant 0 : i32
    return %arg0, %c0_i32, %c0_i32_0 : i32, i32, i32
  }
  func.func @transform_3(%arg0: i32, %arg1: i32) -> (i32, i32, i32) {
    %c0_i32 = arith.constant 0 : i32
    %c0_i32_0 = arith.constant 0 : i32
    return %arg0, %c0_i32, %arg1 : i32, i32, i32
  }
  func.func @transform_4(%arg0: i32, %arg1: i32) -> (i32, i32, i32) {
    %c0_i32 = arith.constant 0 : i32
    %c0_i32_0 = arith.constant 0 : i32
    %c0_i32_1 = arith.constant 0 : i32
    return %c0_i32, %arg1, %c0_i32_0 : i32, i32, i32
  }
  func.func @transform_5(%arg0: i32, %arg1: i32) -> (i32, i32) {
    %c0_i32 = arith.constant 0 : i32
    %c0_i32_0 = arith.constant 0 : i32
    %c0_i32_1 = arith.constant 0 : i32
    return %c0_i32, %c0_i32_0 : i32, i32
  }
  func.func @transform_6(%arg0: i32, %arg1: i32) -> (i32, i32) {
    %c0_i32 = arith.constant 0 : i32
    %c0_i32_0 = arith.constant 0 : i32
    return %arg0, %c0_i32 : i32, i32
  }
}

</mosaic_0001>

<bundles_post_ra>
// kernel: bertdm_forward.1
= control target key start
LH: loop header
LB: loop body
LE: loop exit
PB: predicated region body
PF: predicated region fallthrough
CT: control target
= control target key end

     0   :  { %v868_v1 = vmov 0.0   ;;  %vm869_vm0 = vmmov 0   ;;  %v870_v5 = vmov 0   ;;  %v240_v8 = vlaneseq  ;;  %s1123_s0 = inlined_call_operand.vmem [shape: s32[2,1,1], index: 0, kind: input, shape index: {}]   ;;  %s1124_s1 = inlined_call_operand.vmem [shape: s32[2,1,1], index: 1, kind: input, shape index: {}]   ;;  %s1125_s2 = inlined_call_operand.vmem [shape: bf16[2,8,128], index: 2, kind: input, shape index: {}]   ;;  %s1126_s3 = inlined_call_operand.vmem [shape: bf16[2,128,64], index: 3, kind: input, shape index: {}]   ;;  %s1127_s4 = inlined_call_operand.vmem [shape: f32[3,64,128], index: 4, kind: input, shape index: {}]   ;;  %s1128_s5 = inlined_call_operand.vmem [shape: f32[1,128], index: 5, kind: input, shape index: {}]   ;;  %s1129_s6 = inlined_call_operand.hbm [shape: f32[2,128], index: 6, kind: output, shape index: {}]  }
   0x1   :  { %v830_v0 = vld [vmem:[%s1126_s3 + $0x38] sm:$0xff]   ;;  %727 = vmatprep.subr.bf16.mxu0 %v868_v1  ;;  %29 = vst [vmem:[#allocation2] sm:$0x3] %v868_v1  ;;  %747 = vmatprep.subr.bf16.mxu1 %v868_v1  ;;  %v832_v3 = vld [vmem:[%s1126_s3 + $0x30] sm:$0xff]   ;;  %v834_v6 = vld [vmem:[%s1126_s3 + $0x28] sm:$0xff]  }
   0x2   :  { %v831_v2 = vld [vmem:[%s1126_s3 + $0x78] sm:$0xff]   ;;  %728 = vmatpush3.bf16.msra.mxu0 %v830_v0  ;;  %743 = vmatprep.mubr.msk.bf16.mxu0 %vm869_vm0, %v868_v1  ;;  %v833_v4 = vld [vmem:[%s1126_s3 + $0x70] sm:$0xff]   ;;  %v835_v7 = vld [vmem:[%s1126_s3 + $0x68] sm:$0xff]   ;;  %v241_v11 = vshrl.u32 %v240_v8, 7 }
   0x3   :  { %748 = vmatpush3.bf16.msra.mxu1 %v831_v2  ;;  %729 = vmatprep.subr.bf16.mxu0 %v868_v1  ;;  %v836_v9 = vld [vmem:[%s1126_s3 + $0x20] sm:$0xff]   ;;  %v838_v12 = vld [vmem:[%s1126_s3 + $0x18] sm:$0xff]   ;;  %v840_v19 = vld [vmem:[%s1126_s3 + $0x10] sm:$0xff]  }
   0x4   :  { %749 = vmatprep.subr.bf16.mxu1 %v868_v1  ;;  %763 = vmatprep.mubr.msk.bf16.mxu1 %vm869_vm0, %v868_v1  ;;  %v837_v10 = vld [vmem:[%s1126_s3 + $0x60] sm:$0xff]   ;;  %v839_v13 = vld [vmem:[%s1126_s3 + $0x58] sm:$0xff]   ;;  %v250_v14 = vsub.s32 0, %v241_v11 }
   0x5   :  { %828 = vset.pattern.permute.xlu0 %v870_v5  ;;  %829 = vset.pattern.permute.xlu1 %v870_v5  ;;  %v242_v15 = vld [vmem:[%s1123_s0] sm:$0x1]  ;;  %v243_v18 = vld [vmem:[%s1123_s0 + $0x1] sm:$0x1] }
   0x6   :  { %730 = vmatpush3.bf16.msra.mxu0 %v832_v3  ;;  %v246_v16 = vadd.s32 1, %v242_v15  ;;  %v261_v17 = vrot.slane %v242_v15, %v250_v14  ;;  %v247_v20 = vadd.s32 1, %v243_v18  ;;  %v265_v21 = vrot.slane %v243_v18, %v250_v14  ;;  %v661_v22 = vld [vmem:[%s1124_s1 + $0x1] ss:$0 sm:$0xff] }
   0x7   :  { %750 = vmatpush3.bf16.msra.mxu1 %v833_v4  ;;  %731 = vmatprep.subr.bf16.mxu0 %v868_v1 }
   0x8   :  { %751 = vmatprep.subr.bf16.mxu1 %v868_v1 }
   0xa   :  { %732 = vmatpush3.bf16.msra.mxu0 %v834_v6 }
   0xb   :  { %752 = vmatpush3.bf16.msra.mxu1 %v835_v7  ;;  %733 = vmatprep.subr.bf16.mxu0 %v868_v1 }
   0xc   :  { %753 = vmatprep.subr.bf16.mxu1 %v868_v1 }
   0xe   :  { %734 = vmatpush3.bf16.msra.mxu0 %v836_v9 }
   0xf   :  { %754 = vmatpush3.bf16.msra.mxu1 %v837_v10  ;;  %735 = vmatprep.subr.bf16.mxu0 %v868_v1 }
  0x10   :  { %755 = vmatprep.subr.bf16.mxu1 %v868_v1 }
  0x12   :  { %736 = vmatpush3.bf16.msra.mxu0 %v838_v12 }
  0x13   :  { %11 = vsyncpa [#allocation4], 0  ;;  %756 = vmatpush3.bf16.msra.mxu1 %v839_v13  ;;  %737 = vmatprep.subr.bf16.mxu0 %v868_v1  ;;  %v841_v23 = vld [vmem:[%s1126_s3 + $0x50] sm:$0xff]   ;;  %v251_v24 = vrot.slane %v246_v16, %v250_v14  ;;  %vm280_vm1 = vcmp.eq.s32.totalorder %v241_v11, %v261_v17  ;;  %v255_v26 = vrot.slane %v247_v20, %v250_v14  ;;  %v660_v27 = vld [vmem:[%s1124_s1] ss:$0 sm:$0xff]  ;;  %vm294_vm12 = vcmask 523264  }
  0x14   :  { %757 = vmatprep.subr.bf16.mxu1 %v868_v1  ;;  %v335_v25 = vsel %vm280_vm1, 1, %v870_v5  ;;  %vm281_vm2 = vcmp.eq.s32.totalorder %v241_v11, %v265_v21  ;;  %vm267_vm3 = vcmp.gt.s32.totalorder %v241_v11, %v265_v21  ;;  %vm277_vm5 = vcmp.lt.s32.totalorder %v241_v11, %v661_v22  ;;  %v842_v28 = vld [vmem:[%s1126_s3 + $0x8] sm:$0xff]   ;;  %v844_v33 = vld [vmem:[%s1126_s3] sm:$0xff]   ;;  %v669_v39 = vld [vmem:[%s1127_s4 + $0x78] sm:$0xff]  ;;  %s871_s8 = smov [#allocation3]  }
  0x15   :  { %vm256_vm4 = vcmp.lt.s32.totalorder %v241_v11, %v251_v24  ;;  %338 = vperm.xlu1 %829, %v335_v25   ;;  %vm257_vm6 = vcmp.lt.s32.totalorder %v241_v11, %v255_v26  ;;  %v336_v30 = vsel %vm281_vm2, 1, %v870_v5  ;;  %v843_v31 = vld [vmem:[%s1126_s3 + $0x48] sm:$0xff]   ;;  %vm266_vm7 = vcmp.gt.s32.totalorder %v241_v11, %v261_v17  ;;  %vm279_vm9 = vmand %vm267_vm3, %vm277_vm5  ;;  %v845_v35 = vld [vmem:[%s1126_s3 + $0x40] sm:$0xff]   ;;  %s636_s9 = sshll.u32 %s871_s8, 4  ;;  %s637_s9 = int_to_ptr.vmem [resolvable:$true] %s636_s9 }
  0x16   :  { %738 = vmatpush3.bf16.msra.mxu0 %v840_v19  ;;  %v282_v29 = vsel %vm256_vm4, 1, %v870_v5  ;;  %vm276_vm8 = vcmp.lt.s32.totalorder %v241_v11, %v660_v27  ;;  %v283_v32 = vsel %vm257_vm6, 1, %v870_v5  ;;  %v310_v34 = vsel %vm279_vm9, 1, %v870_v5  ;;  %v30_v37 = vld [vmem:[%s1125_s2] sm:$0xf]  ;;  %v369_v40 = vld [vmem:[%s1127_s4 + $0x38] sm:$0xff]  ;;  %p851_p1 = scmp.lt.s32.totalorder %s637_s9, %s637_s9 }
  0x17   :  { %758 = vmatpush3.bf16.msra.mxu1 %v841_v23  ;;  %739 = vmatprep.subr.bf16.mxu0 %v868_v1  ;;  %vm278_vm10 = vmand %vm266_vm7, %vm276_vm8  ;;  %v31_v38 = vld [vmem:[%s1125_s2 + $0x4] sm:$0xf]  ;;  %v668_v41 = vld [vmem:[%s1127_s4 + $0x70] sm:$0xff]  ;;  %vm381_vm3 = vcmask 1041409   ;;  %s846_s10 = scalar_lea.vmem %s637_s9, 32 }
  0x18   :  { %759 = vmatprep.subr.bf16.mxu1 %v868_v1  ;;  %285 = vperm.xlu0 %828, %v282_v29   ;;  %v309_v36 = vsel %vm278_vm10, 1, %v870_v5  ;;  %v368_v42 = vld [vmem:[%s1127_s4 + $0x30] sm:$0xff]  ;;  %v667_v43 = vld [vmem:[%s1127_s4 + $0x68] sm:$0xff]  ;;  %v666_v45 = vld [vmem:[%s1127_s4 + $0x60] sm:$0xff]  ;;  %p847_p0 = scmp.ne.s32.totalorder %s637_s9, %s846_s10  ;;  %p852_p2 = scmp.lt.s32.totalorder %s846_s10, %s846_s10 }
  0x19   :  { %341 = vperm.xlu1 %829, %v336_v30   ;;  %v367_v44 = vld [vmem:[%s1127_s4 + $0x28] sm:$0xff]  ;;  %v366_v46 = vld [vmem:[%s1127_s4 + $0x20] sm:$0xff]  ;;  %v665_v47 = vld [vmem:[%s1127_s4 + $0x58] sm:$0xff] }
  0x1a   :  { %740 = vmatpush3.bf16.msra.mxu0 %v842_v28  ;;  %v365_v48 = vld [vmem:[%s1127_s4 + $0x18] sm:$0xff]  ;;  %v664_v49 = vld [vmem:[%s1127_s4 + $0x50] sm:$0xff]  ;;  %v663_v51 = vld [vmem:[%s1127_s4 + $0x48] sm:$0xff]  ;;  %p853_p3 = por %p852_p2, %p851_p1 }
  0x1b   :  { %760 = vmatpush3.bf16.msra.mxu1 %v843_v31  ;;  %741 = vmatprep.subr.bf16.mxu0 %v868_v1  ;;  %v364_v50 = vld [vmem:[%s1127_s4 + $0x10] sm:$0xff]  ;;  %v363_v52 = vld [vmem:[%s1127_s4 + $0x8] sm:$0xff]  ;;  %v662_v53 = vld [vmem:[%s1127_s4 + $0x40] sm:$0xff] }
  0x1c   :  { %761 = vmatprep.subr.bf16.mxu1 %v868_v1  ;;  %288 = vperm.xlu0 %828, %v283_v32   ;;  %v362_v54 = vld [vmem:[%s1127_s4] sm:$0xff]  ;;  %p854_p4 = pnand %p853_p3, %p847_p0 }
  0x1d   :  { %315 = vperm.xlu1 %829, %v310_v34  }
  0x1e   :  { %742 = vmatpush3.bf16.msra.mxu0 %v844_v33 }
  0x1f   :  { %762 = vmatpush3.bf16.msra.mxu1 %v845_v35  ;;  %767 = vmatprep.subr.mxu0 %v868_v1 }
  0x20   :  { %312 = vperm.xlu0 %828, %v309_v36   ;;  %786 = vmatprep.subr.mxu1 %v868_v1 }
  0x21   :  { %744 = vmatmul.mubr.bf16.vlgmr.msra.gmra.mxu0 %v30_v37 }
  0x22   :  { %764 = vmatmul.mubr.bf16.vlgmr.msra.gmra.mxu1 %v31_v38  ;;  %783 = vmatprep.mubr.msk.f32.mxu0 %vm869_vm0, %v868_v1 }
  0x23   :  { %802 = vmatprep.mubr.msk.f32.mxu1 %vm869_vm0, %v868_v1  ;;  %768 = vmatpush3.msra.mxu0 %v669_v39 }
  0x24   :  { %769 = vmatprep.subr.mxu0 %v868_v1  ;;  %787 = vmatpush3.msra.mxu1 %v369_v40 }
  0x25   :  { %770 = vmatpush3.msra.mxu0 %v668_v41  ;;  %788 = vmatprep.subr.mxu1 %v868_v1 }
  0x26   :  { %771 = vmatprep.subr.mxu0 %v868_v1  ;;  %789 = vmatpush3.msra.mxu1 %v368_v42 }
  0x27   :  { %772 = vmatpush3.msra.mxu0 %v667_v43  ;;  %790 = vmatprep.subr.mxu1 %v868_v1 }
  0x28   :  { %773 = vmatprep.subr.mxu0 %v868_v1  ;;  %791 = vmatpush3.msra.mxu1 %v367_v44 }
  0x29   :  { %774 = vmatpush3.msra.mxu0 %v666_v45  ;;  %792 = vmatprep.subr.mxu1 %v868_v1  ;;  %v679_v45 = vld [vmem:[%s1127_s4 + $0xb8] sm:$0xff] }
  0x2a   :  { %775 = vmatprep.subr.mxu0 %v868_v1  ;;  %793 = vmatpush3.msra.mxu1 %v366_v46 }
  0x2b   :  { %776 = vmatpush3.msra.mxu0 %v665_v47  ;;  %794 = vmatprep.subr.mxu1 %v868_v1 }
  0x2c   :  { %777 = vmatprep.subr.mxu0 %v868_v1  ;;  %795 = vmatpush3.msra.mxu1 %v365_v48 }
  0x2d   :  { %778 = vmatpush3.msra.mxu0 %v664_v49  ;;  %796 = vmatprep.subr.mxu1 %v868_v1 }
  0x2e   :  { %779 = vmatprep.subr.mxu0 %v868_v1  ;;  %797 = vmatpush3.msra.mxu1 %v364_v50  ;;  %v678_v50 = vld [vmem:[%s1127_s4 + $0xb0] sm:$0xff] }
  0x2f   :  { %780 = vmatpush3.msra.mxu0 %v663_v51  ;;  %798 = vmatprep.subr.mxu1 %v868_v1 }
  0x30   :  { %781 = vmatprep.subr.mxu0 %v868_v1  ;;  %799 = vmatpush3.msra.mxu1 %v363_v52  ;;  %v677_v52 = vld [vmem:[%s1127_s4 + $0xa8] sm:$0xff] }
  0x31   :  { %782 = vmatpush3.msra.mxu0 %v662_v53  ;;  %800 = vmatprep.subr.mxu1 %v868_v1 }
  0x32   :  { %801 = vmatpush3.msra.mxu1 %v362_v54  ;;  %805 = vmatprep.subr.mxu0 %v868_v1 }
  0x90   :  { %v339_v56 = vpop.permute.xlu1 %338 }
  0x91   :  { %vm343_vm11 = vcmp.eq.s32.totalorder %v339_v56, 1  ;;  %v675_v56 = vld [vmem:[%s1127_s4 + $0x98] sm:$0xff] }
  0x93   :  { %v286_v55 = vpop.permute.xlu0 %285 }
  0x94   :  { %v342_v58 = vpop.permute.xlu1 %341  ;;  %vm290_vm13 = vcmp.eq.s32.totalorder %v286_v55, 1  ;;  %v676_v55 = vld [vmem:[%s1127_s4 + $0xa0] sm:$0xff] }
  0x95   :  { %vm344_vm15 = vcmp.eq.s32.totalorder %v342_v58, 1 }
  0x97   :  { %v289_v57 = vpop.permute.xlu0 %288 }
  0x98   :  { %v316_v60 = vpop.permute.xlu1 %315  ;;  %vm291_vm14 = vcmp.eq.s32.totalorder %v289_v57, 1 }
  0x99   :  { %vm318_vm2 = vcmp.eq.s32.totalorder %v316_v60, 1  ;;  %v673_v60 = vld [vmem:[%s1127_s4 + $0x88] sm:$0xff] }
  0x9b   :  { %v313_v59 = vpop.permute.xlu0 %312 }
  0x9c   :  { %vm317_vm1 = vcmp.eq.s32.totalorder %v313_v59, 1  ;;  %v674_v59 = vld [vmem:[%s1127_s4 + $0x90] sm:$0xff] }
  0xe1   :  { %v146_v61 = vpop.f32.mrf.mxu0 }
  0xe2   :  { %v292_v62 = vsel %vm290_vm13, %v146_v61, 0.0  ;;  %v345_v63 = vsel %vm343_vm11, %v146_v61, 0.0  ;;  %v234_v0 = vpop.f32.mrf.mxu1  ;;  %v319_v3 = vsel %vm317_vm1, %v146_v61, 0.0 }
  0xe3   :  { %v295_v2 = vsel %vm294_vm12, %v292_v62, -inf  ;;  %v347_v4 = vsel %vm294_vm12, %v345_v63, 0.0  ;;  %v293_v5 = vsel %vm291_vm14, %v234_v0, 0.0  ;;  %v745_v6 = vpop.f32.mrf.mxu0  ;;  %v320_v12 = vsel %vm318_vm2, %v234_v0, 0.0  ;;  %v672_v63 = vld [vmem:[%s1127_s4 + $0x80] sm:$0xff] }
  0xe4   :  { %v296_v7 = vrot.slane %v295_v2, 4  ;;  %v348_v8 = vrot.slane %v347_v4, 4  ;;  %v302_v9 = vsel %vm294_vm12, %v293_v5, -inf  ;;  %v765_v10 = vpop.f32.mrf.mxu1  ;;  %v346_v13 = vsel %vm344_vm15, %v234_v0, 0.0 }
  0xe5   :  { %v303_v11 = vrot.slane %v302_v9, 4  ;;  %v149_v14 = vpop.f32.mrf.mxu0  ;;  %v321_v16 = vsel %vm294_vm12, %v319_v3, -inf  ;;  %v328_v18 = vsel %vm294_vm12, %v320_v12, -inf  ;;  %v354_v21 = vsel %vm294_vm12, %v346_v13, 0.0 }
  0xe6   :  { %v297_v15 = vmax.f32 %v295_v2, %v296_v7  ;;  %v349_v17 = vadd.f32 %v348_v8, %v347_v4  ;;  %v237_v19 = vpop.f32.mrf.mxu1  ;;  %v355_v25 = vrot.slane %v354_v21, 4  ;;  %v322_v27 = vrot.slane %v321_v16, 4  ;;  %v361_v7 = vld [vmem:[#allocation2] sm:$0x3] }
  0xe7   :  { %v304_v20 = vmax.f32 %v302_v9, %v303_v11  ;;  %v746_v22 = vpop.f32.mrf.mxu0  ;;  %v329_v29 = vrot.slane %v328_v18, 4 }
  0xe8   :  { %v298_v23 = vrot.slane %v297_v15, 2  ;;  %v350_v24 = vrot.slane %v349_v17, 2  ;;  %v766_v26 = vpop.f32.mrf.mxu1  ;;  %v356_v32 = vadd.f32 %v355_v25, %v354_v21  ;;  %v323_v37 = vmax.f32 %v321_v16, %v322_v27 }
  0xe9   :  { %v305_v28 = vrot.slane %v304_v20, 2  ;;  %v330_v39 = vmax.f32 %v328_v18, %v329_v29 }
  0xea   :  { %v299_v30 = vmax.f32 %v297_v15, %v298_v23  ;;  %v351_v31 = vadd.f32 %v350_v24, %v349_v17  ;;  %v357_v36 = vrot.slane %v356_v32, 2  ;;  %v324_v46 = vrot.slane %v323_v37, 2 }
  0xeb   :  { %v306_v33 = vmax.f32 %v304_v20, %v305_v28  ;;  %v331_v47 = vrot.slane %v330_v39, 2 }
  0xec   :  { %v300_v34 = vrot.slane %v299_v30, 1  ;;  %v352_v35 = vrot.slane %v351_v31, 1  ;;  %v358_v41 = vadd.f32 %v357_v36, %v356_v32  ;;  %v325_v53 = vmax.f32 %v323_v37, %v324_v46 }
  0xed   :  { %v307_v38 = vrot.slane %v306_v33, 1  ;;  %v332_v54 = vmax.f32 %v330_v39, %v331_v47 }
  0xee   :  { %v301_v40 = vmax.f32 %v299_v30, %v300_v34  ;;  %v353_v43 = vadd.f32 %v352_v35, %v351_v31  ;;  %v359_v44 = vrot.slane %v358_v41, 1  ;;  %v326_v57 = vrot.slane %v325_v53, 1 }
  0xef   :  { %v308_v42 = vmax.f32 %v306_v33, %v307_v38  ;;  %v333_v58 = vrot.slane %v332_v54, 1 }
  0xf0   :  { %v360_v49 = vadd.f32 %v359_v44, %v358_v41  ;;  %v327_v61 = vmax.f32 %v325_v53, %v326_v57 }
  0xf1   :  { %v382_v48 = vsel %vm381_vm3, %v308_v42, %v301_v40  ;;  %v334_v62 = vmax.f32 %v332_v54, %v333_v58 }
  0xf2   :  { %784 = vmatmul.mubr.msk.f32.vlgmr.msra.gmra.mxu0 %vm294_vm12, %v382_v48  ;;  %v457_v51 = vsel %vm381_vm3, %v360_v49, %v353_v43 }
  0xf3   :  { %806 = vmatpush3.msra.mxu0 %v679_v45  ;;  %821 = vmatprep.mubr.msk.f32.mxu0 %vm869_vm0, %v868_v1  ;;  %v541_v0 = vsel %vm381_vm3, %v334_v62, %v327_v61 }
  0xf4   :  { %807 = vmatprep.subr.mxu0 %v868_v1  ;;  %803 = vmatmul.mubr.msk.f32.vlgmr.msra.gmra.mxu1 %vm294_vm12, %v457_v51 }
  0xf5   :  { %808 = vmatpush3.msra.mxu0 %v678_v50 }
  0xf6   :  { %809 = vmatprep.subr.mxu0 %v868_v1 }
  0xf7   :  { %810 = vmatpush3.msra.mxu0 %v677_v52 }
  0xf8   :  { %811 = vmatprep.subr.mxu0 %v868_v1 }
  0xf9   :  { %812 = vmatpush3.msra.mxu0 %v676_v55 }
  0xfa   :  { %813 = vmatprep.subr.mxu0 %v868_v1 }
  0xfb   :  { %814 = vmatpush3.msra.mxu0 %v675_v56 }
  0xfc   :  { %815 = vmatprep.subr.mxu0 %v868_v1 }
  0xfd   :  { %816 = vmatpush3.msra.mxu0 %v674_v59 }
  0xfe   :  { %817 = vmatprep.subr.mxu0 %v868_v1 }
  0xff   :  { %818 = vmatpush3.msra.mxu0 %v673_v60 }
 0x100   :  { %819 = vmatprep.subr.mxu0 %v868_v1  ;;  %v681_v1 = vld [vmem:[%s1128_s5] ss:$0 sm:$0xff] }
 0x101   :  { %820 = vmatpush3.msra.mxu0 %v672_v63 }
 0x102   :  { %822 = vmatmul.mubr.msk.f32.vlgmr.msra.gmra.mxu0 %vm294_vm12, %v541_v0 }
 0x1b2   :  { %v451_v2 = vpop.f32.mrf.mxu0 }
 0x1b4   :  { %v785_v3 = vpop.f32.mrf.mxu0  ;;  %v526_v4 = vpop.f32.mrf.mxu1 }
 0x1b5   :  { %v527_v6 = vadd.f32 %v526_v4, %v451_v2 }
 0x1b6   :  { %v804_v5 = vpop.f32.mrf.mxu1 }
 0x1c2   :  { %v610_v8 = vpop.f32.mrf.mxu0 }
 0x1c3   :  { %v614_v9 = vadd.f32 %v610_v8, %v527_v6 }
 0x1c4   :  { %v823_v10 = vpop.f32.mrf.mxu0 }
 0x1c5   :  { %v615_v11 = vadd.f32 %v614_v9, %v361_v7 }
 0x1c7   :  { %616 = vst [vmem:[#allocation2] sm:$0x3] %v615_v11 }
 0x1ce   :  { %v620_v12 = vld [vmem:[#allocation2] sm:$0x3] }
 0x1cf   :  { %v628_v13 = vadd.f32 %v681_v1, %v620_v12 }
 0x1d1   :  { %629 = vst [vmem:[#allocation3] sm:$0x3] %v628_v13 }
 0x1d2   :  { %857 = shalt.err (!%p854_p4)
}
 0x1d3   :  { %639 = dma.vmem_to_hbm [thread:$0]  %s637_s9, 32, %s1129_s6, [#allocation4]  }
 0x1d4   :  { %866 = dma.done.wait [#allocation4], 32  }
 0x1d5   :  { %867 = vsyncadd [#allocation4], 4294967264 }
 0x1d6   :  { %643 = vsyncpa [#allocation4], 1 }

</bundles_post_ra>
